<compile_context>
chip_gen: v6e
topology: v6e:2x2x1
jax: 0.10.0
libtpu: 0.0.40
codegen_flags: <defaults>
</compile_context>

<pallas_src>
import functools

import jax
import jax.numpy as jnp
from jax.experimental import pallas as pl
from jax.experimental.pallas import tpu as pltpu


# ------------------------------------------------------------------
# Kernels (pure elementwise, blocks are (rows, lanes) tiles)
# ------------------------------------------------------------------
def _scale_kernel(x_ref, o_ref, *, inv_scale):
    # x = img * (1 / ob_scale); inv_scale is a Python float -> VPU immediate.
    o_ref[...] = x_ref[...] * inv_scale


def _normalize_kernel(x_ref, mean_ref, inv_std_ref, o_ref):
    # x = (img - mean) * (1 / std); stats broadcast over batch via index_map.
    o_ref[...] = (x_ref[...] - mean_ref[...]) * inv_std_ref[...]


# ------------------------------------------------------------------
# Tiling helpers
# ------------------------------------------------------------------
def _split_pixels(P, max_lane=1024):
    """Factor P = S * L with L a multiple of 128 (lane-dense last dim).

    Prefers the largest L <= max_lane that still leaves >= 8 sublanes.
    Falls back to (1, P) (full-dim escape hatch) if P is not 128-divisible.
    """
    if P % 128 != 0:
        return 1, P
    candidates = [l for l in range(128, min(P, max_lane) + 1, 128) if P % l == 0]
    good = [l for l in candidates if P // l >= 8]
    L = max(good) if good else max(candidates)
    return P // L, L


def _choose_row_block(S, L, itemsize, target_bytes=1 << 20):
    """Rows per block: ~1 MiB per buffer, divisor of S, multiple of 8 (or full S)."""
    target_rows = max(1, target_bytes // (L * itemsize))
    if S <= target_rows:
        return S  # full second-to-last dim -> always a legal block shape
    start = (min(S, target_rows) // 8) * 8
    for r in range(start, 7, -8):
        if S % r == 0:
            return r
    return S  # rare fallback (e.g. prime S); still legal, just a big block


# ------------------------------------------------------------------
# Wrapper mirroring ImgPreprocessing.forward
# ------------------------------------------------------------------
def img_preprocessing(img, img_mean=None, img_std=None, scale_img=True):
    """Pallas implementation of ImgPreprocessing.

    img:       (B, C, H, W) float32
    img_mean:  (C, H, W) float32 or None
    img_std:   (C, H, W) float32 (required if img_mean is given)
    """
    B, C, H, W = img.shape
    P = C * H * W
    S, L = _split_pixels(P)
    r = _choose_row_block(S, L, jnp.dtype(img.dtype).itemsize)

    x = img.reshape(B, S, L)  # free reshape (contiguous NCHW)
    grid = (B, S // r)

    # Batch dim squeezed (None) so the kernel sees (r, L), same rank as stats.
    img_spec = pl.BlockSpec((None, r, L), lambda b, s: (b, s, 0))
    out_shape = jax.ShapeDtypeStruct((B, S, L), img.dtype)
    cparams = pltpu.CompilerParams(
        dimension_semantics=("parallel", "parallel"),
    )

    if img_mean is not None:
        mean = img_mean.reshape(S, L).astype(img.dtype)
        # Precompute reciprocal once in XLA; kernel does multiply, not divide.
        inv_std = (1.0 / img_std).reshape(S, L).astype(img.dtype)
        stat_spec = pl.BlockSpec((r, L), lambda b, s: (s, 0))
        out = pl.pallas_call(
            _normalize_kernel,
            out_shape=out_shape,
            grid_spec=pltpu.PrefetchScalarGridSpec(
                num_scalar_prefetch=0,
                grid=grid,
                in_specs=[img_spec, stat_spec, stat_spec],
                out_specs=img_spec,
            ),
            compiler_params=cparams,
        )(x, mean, inv_std)
    else:
        ob_scale = 255.0 if scale_img else 1.0
        kernel = functools.partial(_scale_kernel, inv_scale=1.0 / ob_scale)
        out = pl.pallas_call(
            kernel,
            out_shape=out_shape,
            grid_spec=pltpu.PrefetchScalarGridSpec(
                num_scalar_prefetch=0,
                grid=grid,
                in_specs=[img_spec],
                out_specs=img_spec,
            ),
            compiler_params=cparams,
        )(x)

    return out.reshape(B, C, H, W)


# ------------------------------------------------------------------
# Demo / correctness check
# ------------------------------------------------------------------
if __name__ == "__main__":
    key = jax.random.PRNGKey(0)
    B, C, H, W = 2, 4, 16, 16

    k_img, k_mean, k_std = jax.random.split(key, 3)
    img = jax.random.uniform(k_img, (B, C, H, W), jnp.float32, 0.0, 255.0)

    # ---- Branch 1: default module (img_statistics=None, scale_img=True) ----
    out_scale = img_preprocessing(img, scale_img=True)
    jax.block_until_ready(out_scale)
    ref_scale = img / 255.0
    assert jnp.allclose(out_scale, ref_scale, atol=1e-6, rtol=1e-5)

    # ---- Branch 2: module with img_statistics (synthetic mean/std) ----
    img_mean = jax.random.uniform(k_mean, (C, H, W), jnp.float32, 100.0, 150.0)
    img_std = jax.random.uniform(k_std, (C, H, W), jnp.float32, 10.0, 60.0)
    out_norm = img_preprocessing(img, img_mean=img_mean, img_std=img_std)
    jax.block_until_ready(out_norm)
    ref_norm = (img - img_mean[None]) / img_std[None]
    assert jnp.allclose(out_norm, ref_norm, atol=1e-4, rtol=1e-5)

    print("KERNEL_OK")
</pallas_src>

<mosaic_0001>
module attributes {stable_mosaic.version = 11 : i64} {
  func.func @_scale_kernel(%arg0: i32, %arg1: i32, %arg2: memref<1x8x128xf32, #tpu.memory_space<vmem>>, %arg3: memref<1x8x128xf32, #tpu.memory_space<vmem>>) attributes {dimension_semantics = [#tpu.dimension_semantics<parallel>, #tpu.dimension_semantics<parallel>], iteration_bounds = array<i64: 2, 1>, scalar_prefetch = 0 : i64, scratch_operands = 0 : i64, tpu.core_type = #tpu.core_type<tc>, window_params = [{transform_indices = @transform_0, window_bounds = array<i64: 1, 8, 128>}, {transform_indices = @transform_1, window_bounds = array<i64: 1, 8, 128>}]} {
    %c0 = arith.constant 0 : index
    %c0_0 = arith.constant 0 : index
    %c0_1 = arith.constant 0 : index
    %0 = vector.load %arg2[%c0, %c0_0, %c0_1] : memref<1x8x128xf32, #tpu.memory_space<vmem>>, vector<1x8x128xf32>
    %1 = vector.shape_cast %0 : vector<1x8x128xf32> to vector<8x128xf32>
    %cst = arith.constant 0.00392156886 : f32
    %2 = vector.broadcast %cst : f32 to vector<8x128xf32>
    %3 = arith.mulf %1, %2 : vector<8x128xf32>
    %c0_2 = arith.constant 0 : index
    %c0_3 = arith.constant 0 : index
    %c0_4 = arith.constant 0 : index
    %4 = vector.load %arg3[%c0_2, %c0_3, %c0_4] : memref<1x8x128xf32, #tpu.memory_space<vmem>>, vector<1x8x128xf32>
    %5 = vector.shape_cast %4 : vector<1x8x128xf32> to vector<8x128xf32>
    %6 = vector.shape_cast %3 : vector<8x128xf32> to vector<1x8x128xf32>
    tpu.vector_store %arg3[%c0_2, %c0_3, %c0_4], %6 {strides = array<i32>} : memref<1x8x128xf32, #tpu.memory_space<vmem>>, vector<1x8x128xf32>,
    return
  }
  func.func @transform_0(%arg0: i32, %arg1: i32) -> (i32, i32, i32) {
    %c0_i32 = arith.constant 0 : i32
    %c0_i32_0 = arith.constant 0 : i32
    return %arg0, %arg1, %c0_i32 : i32, i32, i32
  }
  func.func @transform_1(%arg0: i32, %arg1: i32) -> (i32, i32, i32) {
    %c0_i32 = arith.constant 0 : i32
    %c0_i32_0 = arith.constant 0 : i32
    return %arg0, %arg1, %c0_i32 : i32, i32, i32
  }
}

</mosaic_0001>

<bundles_post_ra>
// kernel: tpu_custom_call.1
= control target key start
LH: loop header
LB: loop body
LE: loop exit
PB: predicated region body
PF: predicated region fallthrough
CT: control target
= control target key end

     0   :  { %6 = vsyncpa [#allocation3], 0  ;;  %s578_s0 = inlined_call_operand.hbm [shape: f32[2,8,128], index: 0, kind: input, shape index: {}]   ;;  %s579_s1 = inlined_call_operand.hbm [shape: f32[2,8,128], index: 1, kind: output, shape index: {}]  }
   0x1   :  { %8 = vsyncpa [#allocation3 + $0x1], 0 }
   0x2   :  { %9 = vsyncpa [#allocation4], 0 }
   0x3   :  { %11 = vsyncpa [#allocation4 + $0x1], 0  ;;  %s444_s6 = smov 0   ;;  %s446_s7 = smov 0  }
   0x4   :  { %s448_s8 = smov 0   ;;  %s450_s9 = smov 0  }
   0x5   :  { %s452_s10 = smov 0   ;;  %s454_s11 = smov 0  }
   0x6 LB: > { %s247_s12 = sadd.s32 4294967295, %s430_s11   ;;  %s248_s13 = sadd.s32 4294967294, %s430_s11   ;;  %s430_s11 = sphi %s454_s11, %s17_s11   ;;  %s426_s10 = sphi %s452_s10, %s591_s10   ;;  %s422_s9 = sphi %s450_s9, %s590_s9   ;;  %s418_s8 = sphi %s448_s8, %s589_s8   ;;  %s414_s7 = sphi %s446_s7, %s588_s7   ;;  %s410_s6 = sphi %s444_s6, %s587_s6  }
   0x7   : > { %s29_s14 = sadd.s32 1, %s426_s10  ;;  %s38_s15 = sadd.s32 1, %s418_s8 }
   0x8   : > { %p31_p0 = scmp.ge.s32.totalorder %s29_s14, 2  ;;  %p45_p1 = scmp.ne.s32.totalorder %s418_s8, %s414_s7 }
   0x9   : > { %p46_p2 = scmp.eq.s32.totalorder %s430_s11, 0  ;;  %p51_p3 = scmp.ne.s32.totalorder %s414_s7, %s410_s6 }
   0xa   : > { %s593_s14 = smov (%p31_p0, %s29_s14), 0  ;;  %p52_p5 = scmp.eq.s32.totalorder %s247_s12, 0 }
   0xb   : > { %p485_p4 = por %p46_p2, %p45_p1  ;;  %s33_s17 = ssub.s32 %s426_s10, %s593_s14 }
   0xc   : > { %p77_p6 = scmp.eq.s32.totalorder %s247_s12, 1  ;;  %p36_p7 = scmp.eq.s32.totalorder %s33_s17, 0 }
   0xd   : > { %p491_p8 = por %p52_p5, %p51_p3  ;;  %p83_p10 = scmp.eq.s32.totalorder %s248_s13, 1 }
   0xe   : > { %p495_p9 = por %p77_p6, %p45_p1  ;;  %p272_p13 = scmp.lt.s32.totalorder %s430_s11, 2 }
   0xf   : > { %s500_s20 = scalar_select %p36_p7, %s418_s8, %s38_s15  }
  0x10   : > { %p502_p11 = por %p83_p10, %p51_p3  ;;  %s103_s22 = sand.u32 1, %s418_s8  }
  0x11   : > { %s251_s23 = sshll.u32 %s103_s22, 3  ;;  %s252_s24 = sshll.u32 %s426_s10, 7 }
  0x12   : > { %s583_s21 = scalar_select %p502_p11, 1, 0 }
  0x13   : > { %s113_s27 = scalar_lea.hbm %s578_s0, %s252_s24  ;;  %s107_s28 = scalar_lea.vmem [#allocation2], %s251_s23 }
  0x14   : > { %s115_s29 = sshll.u32 %s107_s28, 4  ;;  %p515_p0 = pnand %p272_p13, %p485_p4  ;;  %s116_s29 = int_to_ptr.vmem [resolvable:$true] %s115_s29 }
  0x15   : > { %p253_p1 = scmp.ge.s32.totalorder %s430_s11, 1  ;;  %p120_p2 = scmp.lt.s32.totalorder %s430_s11, 3 }
  0x16   : > { %s104_s2 = scalar_lea.sflag [#allocation3], %s103_s22  ;;  %p324_p3 = pneg %p515_p0 }
  0x17   : > { %s335_s3 = scalar_lea.vmem %s116_s29, 128  ;;  %s432_s4 = smov [#allocation2]  }
  0x18   : > { %p336_p5 = scmp.ne.s32.totalorder %s116_s29, %s335_s3  ;;  %s340_s5 = sshll.u32 %s432_s4, 4  ;;  %s341_s5 = int_to_ptr.vmem [resolvable:$false] %s340_s5 }
  0x19   : > { %s342_s12 = scalar_lea.vmem %s341_s5, 256  ;;  %p343_p10 = scmp.lt.s32.totalorder %s116_s29, %s341_s5 }
  0x1a   : > { %p338_p6 = pnand %p336_p5, %p324_p3  ;;  %p344_p12 = scmp.lt.s32.totalorder %s342_s12, %s335_s3 }
  0x1c   : > { %p339_p7 = pneg %p338_p6  ;;  %p345_p4 = por %p344_p12, %p343_p10 }
  0x1e   : > { %p346_p13 = pnand %p345_p4, %p339_p7 }
  0x20   : > { %349 = shalt.err (!%p346_p13)
}
  0x21   : > { %267 = dma.hbm_to_vmem [thread:$0]  (!%p515_p0), %s113_s27, 128, %s116_s29, %s104_s2  }
  0x22   : > { %p121_p11 = pnand %p253_p1, %p120_p2 }
  0x23   : > { %s530_s13 = sand.u32 (!%p121_p11), 1, %s414_s7  }
  0x24   : > { %124 = sbr.rel (%p121_p11) target bundleno = 66 (0x42), region = 24  ;;  %s254_s15 = sshll.u32 (!%p121_p11), %s530_s13, 3 }
  0x25   : > { %s127_s16 = scalar_lea.sflag (!%p121_p11), [#allocation3], %s530_s13  ;;  %s130_s17 = scalar_lea.vmem (!%p121_p11), [#allocation2], %s254_s15 }
  0x29   : > { %401 = dma.done.wait (%p491_p8), %s127_s16, 128  }
  0x2a   : > { %403 = vsyncadd (%p491_p8), %s127_s16, 4294967168  ;;  %s148_s22 = scalar_lea.vmem [#allocation5], %s254_s15  ;;  %s257_s24 = sshll.u32 %s422_s9, 7  ;;  %v149_v0 = vld [vmem:[%s130_s17] sm:$0xff] }
  0x2b   : > { %s167_s23 = sshll.u32 %s148_s22, 4  ;;  %v150_v1 = vmul.f32 0.003921569, %v149_v0  ;;  %s165_s27 = scalar_lea.hbm %s579_s1, %s257_s24  ;;  %s168_s23 = int_to_ptr.vmem [resolvable:$true] %s167_s23 }
  0x2c   : > { %s153_s28 = scalar_lea.sflag [#allocation4], %s530_s13  ;;  %s350_s29 = scalar_lea.vmem %s168_s23, 128 }
  0x2d   : > { %151 = vst [vmem:[%s148_s22] sm:$0xff] %v150_v1  ;;  %p351_p11 = scmp.ne.s32.totalorder %s168_s23, %s350_s29  ;;  %s433_s18 = smov [#allocation5]  }
  0x2e   : > { %s354_s30 = sshll.u32 %s433_s18, 4  ;;  %s355_s30 = int_to_ptr.vmem [resolvable:$false] %s354_s30 }
  0x2f   : > { %p352_p12 = pnand %p351_p11, %p495_p9  ;;  %s356_s2 = scalar_lea.vmem %s355_s30, 256 }
  0x30   : > { %p357_p0 = scmp.lt.s32.totalorder %s168_s23, %s355_s30  ;;  %p358_p1 = scmp.lt.s32.totalorder %s356_s2, %s350_s29 }
  0x31   : > { %p353_p8 = pneg %p352_p12 }
  0x32   : > { %p359_p2 = por %p358_p1, %p357_p0 }
  0x34   : > { %p360_p3 = pnand %p359_p2, %p353_p8 }
  0x36   : > { %363 = shalt.err (!%p360_p3)
}
  0x37   : > { %s364_s9 = scalar_lea.hbm %s165_s27, 128  ;;  %s368_s5 = scalar_lea.hbm %s579_s1, 256 }
  0x38   : > { %p365_p5 = scmp.ne.s32.totalorder %s165_s27, %s364_s9  ;;  %p369_p10 = scmp.lt.s32.totalorder %s165_s27, %s579_s1 }
  0x39   : > { %p370_p4 = scmp.lt.s32.totalorder %s368_s5, %s364_s9 }
  0x3a   : > { %p366_p6 = pnand %p365_p5, %p495_p9 }
  0x3b   : > { %p371_p13 = por %p370_p4, %p369_p10 }
  0x3c   : > { %p367_p7 = pneg %p366_p6 }
  0x3e   : > { %p372_p11 = pnand %p371_p13, %p367_p7 }
  0x40   : > { %375 = shalt.err (!%p372_p11)
}
  0x41   : > { %262 = dma.vmem_to_hbm [thread:$0]  (%p495_p9), %s168_s23, 128, %s165_s27, %s153_s28  }
  0x42 PF: > { %s179_s15 = sand.u32 1, %s410_s6   ;;  %p585_p12 = scmp.ne.s32.totalorder %s583_s21, 0 }
  0x43   : > { %p586_p8 = scmp.ge.s32.totalorder %s430_s11, 2  ;;  %s180_s16 = scalar_lea.sflag [#allocation4], %s179_s15 }
  0x45   : > { %p269_p0 = pnand %p586_p8, %p585_p12 }
  0x47   : > { %p270_p1 = pneg %p269_p0 }
  0x49   : > { %405 = dma.done.wait (%p270_p1), %s180_s16, 128  }
  0x4a   : > { %407 = vsyncadd (%p270_p1), %s180_s16, 4294967168  ;;  %s17_s11 = sadd.s32 1, %s430_s11   ;;  %s587_s6 = smov %s414_s7 }
  0x4b   : > { %p14_p2 = scmp.ge.s32.totalorder %s17_s11, 4   ;;  %s588_s7 = smov %s418_s8 }
  0x4c   : > { %s589_s8 = smov %s500_s20  ;;  %s590_s9 = smov %s426_s10 }
  0x4d   : > { %s591_s10 = smov %s593_s14  ;;  %16 = sbr.rel (!%p14_p2) target bundleno = 6 (0x6), region = 69 }
  0x52   :  { %185 = vsyncpa [#allocation3], 1 }
  0x53   :  { %187 = vsyncpa [#allocation3 + $0x1], 1 }
  0x54   :  { %188 = vsyncpa [#allocation4], 1 }
  0x55   :  { %190 = vsyncpa [#allocation4 + $0x1], 1 }

</bundles_post_ra>
